<compile_context>
chip_gen: v6e
topology: v6e:2x2x1
jax: 0.10.0
libtpu: 0.0.40
codegen_flags: <defaults>
</compile_context>

<pallas_src>
import functools

import jax
import jax.numpy as jnp
from jax.experimental import pallas as pl
from jax.experimental.pallas import tpu as pltpu


def _round_up(x: int, m: int) -> int:
    return ((x + m - 1) // m) * m


@functools.lru_cache(maxsize=None)
def _chip_config():
    """(mxu_align, default_tile_batch, vmem_capacity_bytes, epilogue_dtype)."""
    kind = ""
    try:
        kind = jax.devices()[0].device_kind.lower()
    except Exception:
        pass

    if "v5" in kind:                       # v5e: 4x(128x128) MXU, no bf16 VPU
        align, tb_default, phys, epi = 128, 512, 128 << 20, jnp.float32
    elif "v6" in kind:                     # v6e: 2x(256x256) MXU, bf16 VPU
        align, tb_default, phys, epi = 256, 1024, 128 << 20, jnp.bfloat16
    elif "v7" in kind or "7x" in kind:     # v7x: 2x(256x256) MXU, 64 MiB VMEM / TC
        align, tb_default, phys, epi = 256, 1024, 64 << 20, jnp.bfloat16
    else:                                  # unknown: conservative defaults
        align, tb_default, phys, epi = 128, 512, 64 << 20, jnp.float32

    try:
        vmem = int(pltpu.get_tpu_info().vmem_capacity_bytes)
        if vmem > 0:
            phys = vmem
    except Exception:
        pass
    return align, tb_default, phys, epi


def prepare_params(params):
    """One-time parameter prep: bf16 cast + MXU/lane padding (do NOT call per step)."""
    align, _, _, epi_dtype = _chip_config()
    input_dim, hidden = params["w1"].shape
    num_classes = params["w3"].shape[1]
    in_p = _round_up(input_dim, align)
    hid_p = _round_up(hidden, align)
    c_pad = _round_up(num_classes, 128)

    def pad2(a, rows, cols):
        return jnp.pad(a, ((0, rows - a.shape[0]), (0, cols - a.shape[1])))

    return {
        "w1": pad2(params["w1"], in_p, hid_p).astype(jnp.bfloat16),
        "b1": pad2(params["b1"], 1, hid_p).astype(epi_dtype),
        "w2": pad2(params["w2"], hid_p, hid_p).astype(jnp.bfloat16),
        "b2": pad2(params["b2"], 1, hid_p).astype(epi_dtype),
        "w3": pad2(params["w3"], hid_p, c_pad).astype(jnp.bfloat16),
        "b3": pad2(params["b3"], 1, c_pad).astype(jnp.float32),
        "input_dim": int(input_dim),
        "num_classes": int(num_classes),
    }


def _make_kernel(epi_dtype):
    def kernel(x_ref, w1_ref, b1_ref, w2_ref, b2_ref, w3_ref, b3_ref, o_ref):
        # bf16 cast happens here, in VMEM, so the HBM stream for x stays f32-only.
        x = x_ref[...].astype(jnp.bfloat16)
        # Layer 1: MXU matmul (f32 accumulate) + bias + ReLU (epilogue dtype).
        h = jnp.dot(x, w1_ref[...], preferred_element_type=jnp.float32)
        h = jnp.maximum(h.astype(epi_dtype) + b1_ref[...], 0).astype(jnp.bfloat16)
        # Layer 2.
        h = jnp.dot(h, w2_ref[...], preferred_element_type=jnp.float32)
        h = jnp.maximum(h.astype(epi_dtype) + b2_ref[...], 0).astype(jnp.bfloat16)
        # Output projection, no activation; class dim is lane-dense (padded to 128k).
        y = jnp.dot(h, w3_ref[...], preferred_element_type=jnp.float32)
        o_ref[...] = (y + b3_ref[...]).astype(o_ref.dtype)

    return kernel


def classification_head(x, prep, *, tile_batch=None):
    """Fused MLP classification head.

    x:    [batch, input_dim] float32
    prep: output of prepare_params(params)
    returns: [batch, num_classes] float32
    """
    align, tb_default, vmem_cap, epi_dtype = _chip_config()
    batch, input_dim = x.shape
    assert input_dim == prep["input_dim"]
    num_classes = prep["num_classes"]
    in_p, hid_p = prep["w1"].shape
    c_pad = prep["w3"].shape[1]

    # --- Resident operand footprint (single-buffered weights + f32 biases est.). ---
    weight_bytes = (in_p * hid_p + hid_p * hid_p + hid_p * c_pad) * 2 \
        + (2 * hid_p + c_pad) * 4

    def footprint(t):
        x_tile = 2 * t * in_p * 4       # f32 input, double-buffered
        o_tile = 2 * t * c_pad * 4      # f32 output, double-buffered
        interm = 3 * t * hid_p * 4      # f32 MXU results + epilogue copies (approx)
        return x_tile + o_tile + interm + weight_bytes

    # --- Batch tile: 16-aligned (bf16 sublane packing), shrunk to fit VMEM. ---
    if tile_batch is None:
        tile_batch = tb_default
    tb = min(int(tile_batch), _round_up(batch, 16))
    tb = max(16, _round_up(tb, 16))
    budget = int(0.8 * vmem_cap)
    while tb > 16 and footprint(tb) > budget:
        tb = max(16, _round_up(tb // 2, 16))
    # TODO(synk): if weight_bytes alone exceeds the budget (huge hidden on v7x), a
    # hidden/K-tiled fallback with an f32 accumulator scratch is needed.

    vmem_limit = int(min(vmem_cap - (2 << 20),
                         max(32 << 20, footprint(tb) * 5 // 4)))

    # --- Pad batch to a tile multiple and input_dim to the MXU-aligned width. ---
    padded_batch = _round_up(batch, tb)
    pad_rows = padded_batch - batch
    pad_cols = in_p - input_dim
    if pad_rows or pad_cols:
        x = jnp.pad(x, ((0, pad_rows), (0, pad_cols)))
    x = x.astype(jnp.float32)   # f32 stream; bf16 cast is inside the kernel

    grid = (padded_batch // tb,)

    flops = 2 * padded_batch * (in_p * hid_p + hid_p * hid_p + hid_p * c_pad)
    bytes_accessed = (padded_batch * in_p * 4          # f32 input stream
                      + weight_bytes                   # resident weights/biases
                      + padded_batch * c_pad * 4)      # f32 output stream

    def build_in_specs(single_buffer_weights):
        kw = {"pipeline_mode": pl.Buffered(1)} if single_buffer_weights else {}
        return [
            pl.BlockSpec((tb, in_p), lambda i: (i, 0)),              # x: batch-tiled
            pl.BlockSpec((in_p, hid_p), lambda i: (0, 0), **kw),     # w1: resident
            pl.BlockSpec((1, hid_p), lambda i: (0, 0), **kw),        # b1: resident
            pl.BlockSpec((hid_p, hid_p), lambda i: (0, 0), **kw),    # w2: resident
            pl.BlockSpec((1, hid_p), lambda i: (0, 0), **kw),        # b2: resident
            pl.BlockSpec((hid_p, c_pad), lambda i: (0, 0), **kw),    # w3: resident
            pl.BlockSpec((1, c_pad), lambda i: (0, 0), **kw),        # b3: resident
        ]

    def run(single_buffer_weights):
        return pl.pallas_call(
            _make_kernel(epi_dtype),
            out_shape=jax.ShapeDtypeStruct((padded_batch, c_pad), jnp.float32),
            grid=grid,
            in_specs=build_in_specs(single_buffer_weights),
            out_specs=pl.BlockSpec((tb, c_pad), lambda i: (i, 0)),
            compiler_params=pltpu.CompilerParams(
                dimension_semantics=("parallel",),
                vmem_limit_bytes=vmem_limit),
            cost_estimate=pl.CostEstimate(
                flops=int(flops), transcendentals=0,
                bytes_accessed=int(bytes_accessed)),
        )(x, prep["w1"], prep["b1"], prep["w2"], prep["b2"], prep["w3"], prep["b3"])

    try:
        out = run(True)
    except Exception:
        # pl.Buffered(1) rejected on this jax version: fall back to default
        # double-buffered resident weights (correctness identical).
        out = run(False)

    # Strip batch padding and class-lane padding (pure XLA slice).
    return out[:batch, :num_classes]


def init_params(key, input_dim, hidden_dim, num_classes):
    """Deterministic synthetic init (PyTorch-Linear-like uniform fan-in)."""
    ks = jax.random.split(key, 6)

    def lin(kw, kb, fan_in, fan_out):
        bound = 1.0 / jnp.sqrt(fan_in)
        w = jax.random.uniform(kw, (fan_in, fan_out), jnp.float32, -bound, bound)
        b = jax.random.uniform(kb, (1, fan_out), jnp.float32, -bound, bound)
        return w, b

    w1, b1 = lin(ks[0], ks[1], input_dim, hidden_dim)
    w2, b2 = lin(ks[2], ks[3], hidden_dim, hidden_dim)
    w3, b3 = lin(ks[4], ks[5], hidden_dim, num_classes)
    return {"w1": w1, "b1": b1, "w2": w2, "b2": b2, "w3": w3, "b3": b3}


def reference(x, p):
    """Full-f32 reference with the true (PyTorch eval-mode) semantics."""
    h = jnp.maximum(x @ p["w1"] + p["b1"], 0.0)
    h = jnp.maximum(h @ p["w2"] + p["b2"], 0.0)
    return h @ p["w3"] + p["b3"]


if __name__ == "__main__":
    # Small deterministic test. batch is NOT a multiple of the tile so the padding /
    # multi-step-grid path is exercised (tile_batch=32 -> grid of 4).
    batch, input_dim, hidden_dim, num_classes = 100, 64, 32, 9

    key = jax.random.PRNGKey(0)
    kx, kp = jax.random.split(key)
    x = jax.random.normal(kx, (batch, input_dim), jnp.float32)
    params = init_params(kp, input_dim, hidden_dim, num_classes)

    prep = prepare_params(params)          # one-time bf16 cast + padding
    out = classification_head(x, prep, tile_batch=32)
    jax.block_until_ready(out)

    ref = reference(x, params)
    assert out.shape == (batch, num_classes)
    # Kernel uses bf16 operands with f32 accumulation, so allow bf16-level deviation
    # from the exact f32 module (~1e-2).
    max_err = float(jnp.max(jnp.abs(out - ref)))
    assert jnp.allclose(out, ref, atol=5e-2, rtol=5e-2), max_err

    print("KERNEL_OK")
</pallas_src>

<mosaic_0001>
module attributes {stable_mosaic.version = 11 : i64} {
  func.func @kernel(%arg0: i32, %arg1: memref<32x128xf32, #tpu.memory_space<vmem>>, %arg2: memref<128x128xbf16, #tpu.memory_space<vmem>>, %arg3: memref<1x128xf32, #tpu.memory_space<vmem>>, %arg4: memref<128x128xbf16, #tpu.memory_space<vmem>>, %arg5: memref<1x128xf32, #tpu.memory_space<vmem>>, %arg6: memref<128x128xbf16, #tpu.memory_space<vmem>>, %arg7: memref<1x128xf32, #tpu.memory_space<vmem>>, %arg8: memref<32x128xf32, #tpu.memory_space<vmem>>) attributes {dimension_semantics = [#tpu.dimension_semantics<parallel>], iteration_bounds = array<i64: 4>, scalar_prefetch = 0 : i64, scratch_operands = 0 : i64, tpu.core_type = #tpu.core_type<tc>, window_params = [{transform_indices = @transform_0, window_bounds = array<i64: 32, 128>}, {pipeline_mode = #tpu.pipeline_mode<synchronous>, transform_indices = @transform_1, window_bounds = array<i64: 128, 128>}, {pipeline_mode = #tpu.pipeline_mode<synchronous>, transform_indices = @transform_2, window_bounds = array<i64: 1, 128>}, {pipeline_mode = #tpu.pipeline_mode<synchronous>, transform_indices = @transform_3, window_bounds = array<i64: 128, 128>}, {pipeline_mode = #tpu.pipeline_mode<synchronous>, transform_indices = @transform_4, window_bounds = array<i64: 1, 128>}, {pipeline_mode = #tpu.pipeline_mode<synchronous>, transform_indices = @transform_5, window_bounds = array<i64: 128, 128>}, {pipeline_mode = #tpu.pipeline_mode<synchronous>, transform_indices = @transform_6, window_bounds = array<i64: 1, 128>}, {transform_indices = @transform_7, window_bounds = array<i64: 32, 128>}]} {
    %c0 = arith.constant 0 : index
    %c0_0 = arith.constant 0 : index
    %0 = vector.load %arg1[%c0, %c0_0] : memref<32x128xf32, #tpu.memory_space<vmem>>, vector<32x128xf32>
    %1 = arith.truncf %0 : vector<32x128xf32> to vector<32x128xbf16>
    %c0_1 = arith.constant 0 : index
    %c0_2 = arith.constant 0 : index
    %2 = vector.load %arg2[%c0_1, %c0_2] : memref<128x128xbf16, #tpu.memory_space<vmem>>, vector<128x128xbf16>
    %cst = arith.constant dense<0.000000e+00> : vector<32x128xf32>
    %3 = tpu.matmul %1, %2, %cst {dimension_numbers = #tpu.dot_dimension_numbers<[1], [0], [0], [1], [0, 0, 1, 1], [], []>} : vector<32x128xbf16>, vector<128x128xbf16>, vector<32x128xf32> -> vector<32x128xf32>
    %c0_3 = arith.constant 0 : index
    %c0_4 = arith.constant 0 : index
    %4 = vector.load %arg3[%c0_3, %c0_4] : memref<1x128xf32, #tpu.memory_space<vmem>>, vector<1x128xf32>
    %5 = vector.broadcast %4 : vector<1x128xf32> to vector<32x128xf32>
    %6 = arith.addf %3, %5 : vector<32x128xf32>
    %cst_5 = arith.constant 0.000000e+00 : f32
    %7 = vector.broadcast %cst_5 : f32 to vector<32x128xf32>
    %8 = arith.maximumf %6, %7 : vector<32x128xf32>
    %9 = arith.truncf %8 : vector<32x128xf32> to vector<32x128xbf16>
    %c0_6 = arith.constant 0 : index
    %c0_7 = arith.constant 0 : index
    %10 = vector.load %arg4[%c0_6, %c0_7] : memref<128x128xbf16, #tpu.memory_space<vmem>>, vector<128x128xbf16>
    %cst_8 = arith.constant dense<0.000000e+00> : vector<32x128xf32>
    %11 = tpu.matmul %9, %10, %cst_8 {dimension_numbers = #tpu.dot_dimension_numbers<[1], [0], [0], [1], [0, 0, 1, 1], [], []>} : vector<32x128xbf16>, vector<128x128xbf16>, vector<32x128xf32> -> vector<32x128xf32>
    %c0_9 = arith.constant 0 : index
    %c0_10 = arith.constant 0 : index
    %12 = vector.load %arg5[%c0_9, %c0_10] : memref<1x128xf32, #tpu.memory_space<vmem>>, vector<1x128xf32>
    %13 = vector.broadcast %12 : vector<1x128xf32> to vector<32x128xf32>
    %14 = arith.addf %11, %13 : vector<32x128xf32>
    %cst_11 = arith.constant 0.000000e+00 : f32
    %15 = vector.broadcast %cst_11 : f32 to vector<32x128xf32>
    %16 = arith.maximumf %14, %15 : vector<32x128xf32>
    %17 = arith.truncf %16 : vector<32x128xf32> to vector<32x128xbf16>
    %c0_12 = arith.constant 0 : index
    %c0_13 = arith.constant 0 : index
    %18 = vector.load %arg6[%c0_12, %c0_13] : memref<128x128xbf16, #tpu.memory_space<vmem>>, vector<128x128xbf16>
    %cst_14 = arith.constant dense<0.000000e+00> : vector<32x128xf32>
    %19 = tpu.matmul %17, %18, %cst_14 {dimension_numbers = #tpu.dot_dimension_numbers<[1], [0], [0], [1], [0, 0, 1, 1], [], []>} : vector<32x128xbf16>, vector<128x128xbf16>, vector<32x128xf32> -> vector<32x128xf32>
    %c0_15 = arith.constant 0 : index
    %c0_16 = arith.constant 0 : index
    %20 = vector.load %arg7[%c0_15, %c0_16] : memref<1x128xf32, #tpu.memory_space<vmem>>, vector<1x128xf32>
    %21 = vector.broadcast %20 : vector<1x128xf32> to vector<32x128xf32>
    %22 = arith.addf %19, %21 : vector<32x128xf32>
    %c0_17 = arith.constant 0 : index
    %c0_18 = arith.constant 0 : index
    %23 = vector.load %arg8[%c0_17, %c0_18] : memref<32x128xf32, #tpu.memory_space<vmem>>, vector<32x128xf32>
    tpu.vector_store %arg8[%c0_17, %c0_18], %22 {strides = array<i32>} : memref<32x128xf32, #tpu.memory_space<vmem>>, vector<32x128xf32>,
    return
  }
  func.func @transform_0(%arg0: i32) -> (i32, i32) {
    %c0_i32 = arith.constant 0 : i32
    %c0_i32_0 = arith.constant 0 : i32
    return %arg0, %c0_i32 : i32, i32
  }
  func.func @transform_1(%arg0: i32) -> (i32, i32) {
    %c0_i32 = arith.constant 0 : i32
    %c0_i32_0 = arith.constant 0 : i32
    %c0_i32_1 = arith.constant 0 : i32
    return %c0_i32, %c0_i32_0 : i32, i32
  }
  func.func @transform_2(%arg0: i32) -> (i32, i32) {
    %c0_i32 = arith.constant 0 : i32
    %c0_i32_0 = arith.constant 0 : i32
    %c0_i32_1 = arith.constant 0 : i32
    return %c0_i32, %c0_i32_0 : i32, i32
  }
  func.func @transform_3(%arg0: i32) -> (i32, i32) {
    %c0_i32 = arith.constant 0 : i32
    %c0_i32_0 = arith.constant 0 : i32
    %c0_i32_1 = arith.constant 0 : i32
    return %c0_i32, %c0_i32_0 : i32, i32
  }
  func.func @transform_4(%arg0: i32) -> (i32, i32) {
    %c0_i32 = arith.constant 0 : i32
    %c0_i32_0 = arith.constant 0 : i32
    %c0_i32_1 = arith.constant 0 : i32
    return %c0_i32, %c0_i32_0 : i32, i32
  }
  func.func @transform_5(%arg0: i32) -> (i32, i32) {
    %c0_i32 = arith.constant 0 : i32
    %c0_i32_0 = arith.constant 0 : i32
    %c0_i32_1 = arith.constant 0 : i32
    return %c0_i32, %c0_i32_0 : i32, i32
  }
  func.func @transform_6(%arg0: i32) -> (i32, i32) {
    %c0_i32 = arith.constant 0 : i32
    %c0_i32_0 = arith.constant 0 : i32
    %c0_i32_1 = arith.constant 0 : i32
    return %c0_i32, %c0_i32_0 : i32, i32
  }
  func.func @transform_7(%arg0: i32) -> (i32, i32) {
    %c0_i32 = arith.constant 0 : i32
    %c0_i32_0 = arith.constant 0 : i32
    return %arg0, %c0_i32 : i32, i32
  }
}

module attributes {stable_mosaic.version = 11 : i64} {
  func.func @kernel(%arg0: i32, %arg1: memref<32x128xf32, #tpu.memory_space<vmem>>, %arg2: memref<128x128xbf16, #tpu.memory_space<vmem>>, %arg3: memref<1x128xf32, #tpu.memory_space<vmem>>, %arg4: memref<128x128xbf16, #tpu.memory_space<vmem>>, %arg5: memref<1x128xf32, #tpu.memory_space<vmem>>, %arg6: memref<128x128xbf16, #tpu.memory_space<vmem>>, %arg7: memref<1x128xf32, #tpu.memory_space<vmem>>, %arg8: memref<32x128xf32, #tpu.memory_space<vmem>>) attributes {dimension_semantics = [#tpu.dimension_semantics<parallel>], iteration_bounds = array<i64: 4>, scalar_prefetch = 0 : i64, scratch_operands = 0 : i64, tpu.core_type = #tpu.core_type<tc>, window_params = [{transform_indices = @transform_0, window_bounds = array<i64: 32, 128>}, {pipeline_mode = #tpu.pipeline_mode<synchronous>, transform_indices = @transform_1, window_bounds = array<i64: 128, 128>}, {pipeline_mode = #tpu.pipeline_mode<synchronous>, transform_indices = @transform_2, window_bounds = array<i64: 1, 128>}, {pipeline_mode = #tpu.pipeline_mode<synchronous>, transform_indices = @transform_3, window_bounds = array<i64: 128, 128>}, {pipeline_mode = #tpu.pipeline_mode<synchronous>, transform_indices = @transform_4, window_bounds = array<i64: 1, 128>}, {pipeline_mode = #tpu.pipeline_mode<synchronous>, transform_indices = @transform_5, window_bounds = array<i64: 128, 128>}, {pipeline_mode = #tpu.pipeline_mode<synchronous>, transform_indices = @transform_6, window_bounds = array<i64: 1, 128>}, {transform_indices = @transform_7, window_bounds = array<i64: 32, 128>}]} {
    %c0 = arith.constant 0 : index
    %c0_0 = arith.constant 0 : index
    %0 = vector.load %arg1[%c0, %c0_0] : memref<32x128xf32, #tpu.memory_space<vmem>>, vector<32x128xf32>
    %1 = arith.truncf %0 : vector<32x128xf32> to vector<32x128xbf16>
    %c0_1 = arith.constant 0 : index
    %c0_2 = arith.constant 0 : index
    %2 = vector.load %arg2[%c0_1, %c0_2] : memref<128x128xbf16, #tpu.memory_space<vmem>>, vector<128x128xbf16>
    %cst = arith.constant dense<0.000000e+00> : vector<32x128xf32>
    %3 = tpu.matmul %1, %2, %cst {dimension_numbers = #tpu.dot_dimension_numbers<[1], [0], [0], [1], [0, 0, 1, 1], [], []>} : vector<32x128xbf16>, vector<128x128xbf16>, vector<32x128xf32> -> vector<32x128xf32>
    %c0_3 = arith.constant 0 : index
    %c0_4 = arith.constant 0 : index
    %4 = vector.load %arg3[%c0_3, %c0_4] : memref<1x128xf32, #tpu.memory_space<vmem>>, vector<1x128xf32>
    %5 = vector.broadcast %4 : vector<1x128xf32> to vector<32x128xf32>
    %6 = arith.addf %3, %5 : vector<32x128xf32>
    %cst_5 = arith.constant 0.000000e+00 : f32
    %7 = vector.broadcast %cst_5 : f32 to vector<32x128xf32>
    %8 = arith.maximumf %6, %7 : vector<32x128xf32>
    %9 = arith.truncf %8 : vector<32x128xf32> to vector<32x128xbf16>
    %c0_6 = arith.constant 0 : index
    %c0_7 = arith.constant 0 : index
    %10 = vector.load %arg4[%c0_6, %c0_7] : memref<128x128xbf16, #tpu.memory_space<vmem>>, vector<128x128xbf16>
    %cst_8 = arith.constant dense<0.000000e+00> : vector<32x128xf32>
    %11 = tpu.matmul %9, %10, %cst_8 {dimension_numbers = #tpu.dot_dimension_numbers<[1], [0], [0], [1], [0, 0, 1, 1], [], []>} : vector<32x128xbf16>, vector<128x128xbf16>, vector<32x128xf32> -> vector<32x128xf32>
    %c0_9 = arith.constant 0 : index
    %c0_10 = arith.constant 0 : index
    %12 = vector.load %arg5[%c0_9, %c0_10] : memref<1x128xf32, #tpu.memory_space<vmem>>, vector<1x128xf32>
    %13 = vector.broadcast %12 : vector<1x128xf32> to vector<32x128xf32>
    %14 = arith.addf %11, %13 : vector<32x128xf32>
    %cst_11 = arith.constant 0.000000e+00 : f32
    %15 = vector.broadcast %cst_11 : f32 to vector<32x128xf32>
    %16 = arith.maximumf %14, %15 : vector<32x128xf32>
    %17 = arith.truncf %16 : vector<32x128xf32> to vector<32x128xbf16>
    %c0_12 = arith.constant 0 : index
    %c0_13 = arith.constant 0 : index
    %18 = vector.load %arg6[%c0_12, %c0_13] : memref<128x128xbf16, #tpu.memory_space<vmem>>, vector<128x128xbf16>
    %cst_14 = arith.constant dense<0.000000e+00> : vector<32x128xf32>
    %19 = tpu.matmul %17, %18, %cst_14 {dimension_numbers = #tpu.dot_dimension_numbers<[1], [0], [0], [1], [0, 0, 1, 1], [], []>} : vector<32x128xbf16>, vector<128x128xbf16>, vector<32x128xf32> -> vector<32x128xf32>
    %c0_15 = arith.constant 0 : index
    %c0_16 = arith.constant 0 : index
    %20 = vector.load %arg7[%c0_15, %c0_16] : memref<1x128xf32, #tpu.memory_space<vmem>>, vector<1x128xf32>
    %21 = vector.broadcast %20 : vector<1x128xf32> to vector<32x128xf32>
    %22 = arith.addf %19, %21 : vector<32x128xf32>
    %c0_17 = arith.constant 0 : index
    %c0_18 = arith.constant 0 : index
    %23 = vector.load %arg8[%c0_17, %c0_18] : memref<32x128xf32, #tpu.memory_space<vmem>>, vector<32x128xf32>
    tpu.vector_store %arg8[%c0_17, %c0_18], %22 {strides = array<i32>} : memref<32x128xf32, #tpu.memory_space<vmem>>, vector<32x128xf32>,
    return
  }
  func.func @transform_0(%arg0: i32) -> (i32, i32) {
    %c0_i32 = arith.constant 0 : i32
    %c0_i32_0 = arith.constant 0 : i32
    return %arg0, %c0_i32 : i32, i32
  }
  func.func @transform_1(%arg0: i32) -> (i32, i32) {
    %c0_i32 = arith.constant 0 : i32
    %c0_i32_0 = arith.constant 0 : i32
    %c0_i32_1 = arith.constant 0 : i32
    return %c0_i32, %c0_i32_0 : i32, i32
  }
  func.func @transform_2(%arg0: i32) -> (i32, i32) {
    %c0_i32 = arith.constant 0 : i32
    %c0_i32_0 = arith.constant 0 : i32
    %c0_i32_1 = arith.constant 0 : i32
    return %c0_i32, %c0_i32_0 : i32, i32
  }
  func.func @transform_3(%arg0: i32) -> (i32, i32) {
    %c0_i32 = arith.constant 0 : i32
    %c0_i32_0 = arith.constant 0 : i32
    %c0_i32_1 = arith.constant 0 : i32
    return %c0_i32, %c0_i32_0 : i32, i32
  }
  func.func @transform_4(%arg0: i32) -> (i32, i32) {
    %c0_i32 = arith.constant 0 : i32
    %c0_i32_0 = arith.constant 0 : i32
    %c0_i32_1 = arith.constant 0 : i32
    return %c0_i32, %c0_i32_0 : i32, i32
  }
  func.func @transform_5(%arg0: i32) -> (i32, i32) {
    %c0_i32 = arith.constant 0 : i32
    %c0_i32_0 = arith.constant 0 : i32
    %c0_i32_1 = arith.constant 0 : i32
    return %c0_i32, %c0_i32_0 : i32, i32
  }
  func.func @transform_6(%arg0: i32) -> (i32, i32) {
    %c0_i32 = arith.constant 0 : i32
    %c0_i32_0 = arith.constant 0 : i32
    %c0_i32_1 = arith.constant 0 : i32
    return %c0_i32, %c0_i32_0 : i32, i32
  }
  func.func @transform_7(%arg0: i32) -> (i32, i32) {
    %c0_i32 = arith.constant 0 : i32
    %c0_i32_0 = arith.constant 0 : i32
    return %arg0, %c0_i32 : i32, i32
  }
}

</mosaic_0001>

<bundles_post_ra>
// kernel: tpu_custom_call.1
= control target key start
LH: loop header
LB: loop body
LE: loop exit
PB: predicated region body
PF: predicated region fallthrough
CT: control target
= control target key end

     0   :  { %s1536_s0 = inlined_call_operand.hbm [shape: f32[128,128], index: 0, kind: input, shape index: {}]   ;;  %s1537_s1 = inlined_call_operand.hbm [shape: bf16[128,128], index: 1, kind: input, shape index: {}]   ;;  %s1538_s2 = inlined_call_operand.vmem [shape: f32[1,128], index: 2, kind: input, shape index: {}]   ;;  %s1539_s3 = inlined_call_operand.hbm [shape: bf16[128,128], index: 3, kind: input, shape index: {}]   ;;  %s1540_s4 = inlined_call_operand.vmem [shape: f32[1,128], index: 4, kind: input, shape index: {}]   ;;  %s1541_s5 = inlined_call_operand.hbm [shape: bf16[128,128], index: 5, kind: input, shape index: {}]   ;;  %s1542_s6 = inlined_call_operand.vmem [shape: f32[1,128], index: 6, kind: input, shape index: {}]   ;;  %s1543_s7 = inlined_call_operand.hbm [shape: f32[128,128], index: 7, kind: output, shape index: {}]  }
   0x1   :  { %1548 = sst [smem:[#allocation15_spill]] %s1537_s1 }
   0x2   :  { %12 = vsyncpa [#allocation3], 0 }
   0x3   :  { %14 = vsyncpa [#allocation3 + $0x1], 0 }
   0x4   :  { %15 = vsyncpa [#allocation6], 0 }
   0x5   :  { %16 = vsyncpa [#allocation9], 0 }
   0x6   :  { %17 = vsyncpa [#allocation4], 0 }
   0x7   :  { %19 = vsyncpa [#allocation4 + $0x1], 0  ;;  %s1319_s24 = smov 0   ;;  %s1321_s25 = smov 0  }
   0x8   :  { %s1323_s26 = smov 0   ;;  %s1325_s27 = smov 0  }
   0x9 LB: > { %s1340_s28 = sadd.s32 4294967295, %s1266_s27   ;;  %s842_s29 = sadd.s32 4294967294, %s1266_s27   ;;  %s1266_s27 = sphi %s1325_s27, %s1568_s27   ;;  %s1262_s26 = sphi %s1323_s26, %s1567_s26   ;;  %s1258_s25 = sphi %s1321_s25, %s1566_s25   ;;  %s1254_s24 = sphi %s1319_s24, %s1565_s24  }
   0xa   : > { %p45_p0 = scmp.ne.s32.totalorder %s1258_s25, %s1254_s24  ;;  %p1544_p1 = scmp.eq.s32.totalorder %s1340_s28, 0 }
   0xb   : > { %p201_p3 = scmp.eq.s32.totalorder %s842_s29, 3  ;;  %p843_p5 = scmp.ge.s32.totalorder %s1266_s27, 1 }
   0xc   : > { %p1349_p4 = por %p1544_p1, %p45_p0  ;;  %p208_p7 = scmp.lt.s32.totalorder %s1266_s27, 5 }
   0xd   : > { %p1354_p6 = por %p201_p3, %p45_p0  ;;  %s1268_s10 = smov [#allocation5]  }
   0xe   : > { %s1549_s30 = scalar_select %p1349_p4, 1, 0 }
   0xf   : > { %s1550_s8 = scalar_select %p1354_p6, 1, 0 }
  0x10   : > { %p1359_p8 = pnand %p843_p5, %p208_p7  ;;  %s220_s11 = sshll.u32 %s1268_s10, 4  ;;  %s221_s11 = int_to_ptr.vmem [resolvable:$true] %s220_s11 }
  0x11   : > { %s1269_s13 = smov [#allocation7]   ;;  %s1270_s15 = smov [#allocation8]  }
  0x12   : > { %s1551_s9 = scalar_select %p1359_p8, 1, 0 }
  0x13   : > { %p997_p9 = pneg %p1359_p8  ;;  %s236_s14 = sshll.u32 %s1269_s13, 4  ;;  %s237_s14 = int_to_ptr.vmem [resolvable:$true] %s236_s14 }
  0x14   : > { %s252_s16 = sshll.u32 %s1270_s15, 4  ;;  %s1099_s17 = scalar_lea.vmem %s221_s11, 1024  ;;  %s253_s16 = int_to_ptr.vmem [resolvable:$true] %s252_s16 }
  0x15   : > { %p1367_p10 = pnand %p997_p9, %p1544_p1  ;;  %p1100_p12 = scmp.ne.s32.totalorder %s221_s11, %s1099_s17 }
  0x16   : > { %p1107_p3 = scmp.lt.s32.totalorder %s221_s11, %s221_s11  ;;  %p1108_p5 = scmp.lt.s32.totalorder %s1099_s17, %s1099_s17 }
  0x17   : > { %p1090_p11 = pneg %p1367_p10 }
  0x18   : > { %p1109_p7 = por %p1108_p5, %p1107_p3 }
  0x19   : > { %p1102_p13 = pnand %p1100_p12, %p1090_p11 }
  0x1b   : > { %p1103_p0 = pneg %p1102_p13 }
  0x1d   : > { %p1110_p9 = pnand %p1109_p7, %p1103_p0 }
  0x1f   : > { %1113 = shalt.err (!%p1110_p9)
}
  0x20   : > { %s1271_s18 = smov 64   ;;  %s1272_s19 = smov 4  }
  0x21   : > { %s1553_s1 = sld [smem:[#allocation15_spill]]  ;;  %s1125_s22 = scalar_lea.vmem %s237_s14, 1024 }
  0x22   : > { %p1126_p1 = scmp.ne.s32.totalorder %s237_s14, %s1125_s22  ;;  %p1133_p2 = scmp.lt.s32.totalorder %s237_s14, %s237_s14 }
  0x23   : > { %p1134_p6 = scmp.lt.s32.totalorder %s1125_s22, %s1125_s22 }
  0x24   : > { %p1128_p12 = pnand %p1126_p1, %p1090_p11 }
  0x25   : > { %p1135_p3 = por %p1134_p6, %p1133_p2 }
  0x26   : > { %p1129_p13 = pneg %p1128_p12 }
  0x27   : > { %1000 = dma.hbm_to_vmem [thread:$0]  (!%p1367_p10), %s1553_s1, 1024, %s221_s11, [#allocation6], %s1271_s18, %s1271_s18, %s1272_s19  }
  0x28   : > { %p1136_p0 = pnand %p1135_p3, %p1129_p13 }
  0x2a   : > { %1139 = shalt.err (!%p1136_p0)
}
  0x2b   : > { %1003 = dma.hbm_to_vmem [thread:$0]  (!%p1367_p10), %s1539_s3, 1024, %s237_s14, [#allocation6], %s1271_s18, %s1271_s18, %s1272_s19  }
  0x2c   : > { %s1151_s10 = scalar_lea.vmem %s253_s16, 1024  ;;  %p1159_p9 = scmp.lt.s32.totalorder %s253_s16, %s253_s16 }
  0x2d   : > { %p1152_p5 = scmp.ne.s32.totalorder %s253_s16, %s1151_s10  ;;  %p1160_p12 = scmp.lt.s32.totalorder %s1151_s10, %s1151_s10 }
  0x2f   : > { %p1154_p7 = pnand %p1152_p5, %p1090_p11  ;;  %p1161_p4 = por %p1160_p12, %p1159_p9 }
  0x31   : > { %p1155_p1 = pneg %p1154_p7 }
  0x33   : > { %p1162_p2 = pnand %p1161_p4, %p1155_p1 }
  0x35   : > { %1165 = shalt.err (!%p1162_p2)
}
  0x36   : > { %1006 = dma.hbm_to_vmem [thread:$0]  (!%p1367_p10), %s1541_s5, 1024, %s253_s16, [#allocation9], %s1271_s18, %s1271_s18, %s1272_s19  }
  0x37   : > { %s1398_s14 = sadd.s32 1, %s1266_s27   ;;  %s32_s12 = sadd.s32 1, %s1262_s26 }
  0x38   : > { %s29_s15 = ssub.s32 %s1266_s27, %s1398_s14  ;;  %p39_p6 = scmp.ne.s32.totalorder %s1262_s26, %s1258_s25 }
  0x39   : > { %p30_p4 = scmp.eq.s32.totalorder %s29_s15, 0  ;;  %p40_p11 = scmp.eq.s32.totalorder %s1266_s27, 0 }
  0x3a   : > { %p1018_p13 = scmp.lt.s32.totalorder %s1266_s27, 4  ;;  %p1554_p0 = scmp.eq.s32.totalorder %s1340_s28, 3 }
  0x3b   : > { %s1408_s17 = scalar_select %p30_p4, %s1262_s26, %s32_s12  }
  0x3c   : > { %p41_p3 = por %p40_p11, %p39_p6  ;;  %p1412_p5 = por %p1554_p0, %p39_p6 }
  0x3d   : > { %s269_s21 = sand.u32 1, %s1262_s26   ;;  %s889_s22 = sshll.u32 %s1266_s27, 9 }
  0x3e   : > { %s1555_s20 = scalar_select %p1412_p5, 1, 0 }
  0x3f   : > { %s848_s16 = sshll.u32 %s269_s21, 5  ;;  %s1421_s23 = scalar_lea.hbm %s1536_s0, %s889_s22 }
  0x40   : > { %s273_s29 = scalar_lea.vmem [#allocation2], %s848_s16  ;;  %p1423_p10 = pnand %p1018_p13, %p41_p3 }
  0x41   : > { %s280_s10 = sshll.u32 %s273_s29, 4  ;;  %s1429_s13 = scalar_lea.sflag [#allocation3], %s269_s21  ;;  %s1427_s10 = int_to_ptr.vmem [resolvable:$true] %s280_s10 }
  0x42   : > { %s1166_s15 = scalar_lea.hbm %s1421_s23, 512  ;;  %p1168_p1 = pneg %p1423_p10 }
  0x43   : > { %p1167_p7 = scmp.ne.s32.totalorder %s1421_s23, %s1166_s15  ;;  %s1171_s16 = scalar_lea.hbm %s1536_s0, 2048 }
  0x44   : > { %p1172_p2 = scmp.lt.s32.totalorder %s1421_s23, %s1536_s0  ;;  %p1173_p4 = scmp.lt.s32.totalorder %s1171_s16, %s1166_s15 }
  0x45   : > { %p1169_p9 = pnand %p1168_p1, %p1167_p7 }
  0x46   : > { %p1174_p6 = por %p1173_p4, %p1172_p2 }
  0x47   : > { %p1170_p12 = pneg %p1169_p9 }
  0x49   : > { %p1175_p11 = pnand %p1174_p6, %p1170_p12 }
  0x4b   : > { %1178 = shalt.err (!%p1175_p11)
}
  0x4c   : > { %s1179_s21 = scalar_lea.vmem %s1427_s10, 512  ;;  %s1273_s29 = smov [#allocation2]  }
  0x4d   : > { %p1180_p13 = scmp.ne.s32.totalorder %s1427_s10, %s1179_s21  ;;  %s1184_s1 = sshll.u32 %s1273_s29, 4  ;;  %s1185_s1 = int_to_ptr.vmem [resolvable:$false] %s1184_s1 }
  0x4e   : > { %s1186_s12 = scalar_lea.vmem %s1185_s1, 1024  ;;  %p1187_p7 = scmp.lt.s32.totalorder %s1427_s10, %s1185_s1 }
  0x4f   : > { %p1182_p3 = pnand %p1180_p13, %p1168_p1  ;;  %p1188_p9 = scmp.lt.s32.totalorder %s1186_s12, %s1179_s21 }
  0x51   : > { %p1183_p0 = pneg %p1182_p3  ;;  %p1189_p5 = por %p1188_p9, %p1187_p7 }
  0x53   : > { %p1190_p8 = pnand %p1189_p5, %p1183_p0 }
  0x55   : > { %1193 = shalt.err (!%p1190_p8)
}
  0x56   : > { %s1274_s15 = smov 128   ;;  %s1275_s22 = smov 8  }
  0x57   : > { %1010 = dma.hbm_to_vmem [thread:$0]  (!%p1423_p10), %s1421_s23, 512, %s1427_s10, %s1429_s13, %s1274_s15, %s1274_s15, %s1275_s22  }
  0x58   : > { %p1557_p1 = scmp.ne.s32.totalorder %s1551_s9, 0 }
  0x59   : > { %s1453_s16 = sand.u32 (!%p1557_p1), 1, %s1258_s25   ;;  %p1558_p8 = scmp.ne.s32.totalorder (!%p1557_p1), %s1549_s30, 0 }
  0x5a   : > { %292 = sbr.rel (%p1557_p1) target bundleno = 762 (0x2fa), region = 48  ;;  %s852_s1 = sshll.u32 (!%p1557_p1), %s1453_s16, 5 }
  0x5b   : > { %s295_s18 = scalar_lea.sflag (!%p1557_p1), [#allocation3], %s1453_s16  ;;  %s1459_s19 = scalar_lea.vmem (!%p1557_p1), [#allocation2], %s852_s1 }
  0x5f   : > { %1237 = dma.done.wait (%p1558_p8), %s295_s18, 512  }
  0x60   : > { %1239 = vsyncadd (%p1558_p8), %s295_s18, 4294966784  ;;  %p1559_p5 = scmp.eq.s32.totalorder %s1340_s28, 0 }
  0x62   : > { %1241 = dma.done.wait (%p1559_p5), [#allocation6], 2048   ;;  %p1560_p10 = pmov %p1559_p5 }
  0x63   : > { %p1561_p12 = pmov %p1559_p5 }
  0x64   : > { %1243 = vsyncadd (%p1560_p10), [#allocation6], 4294965248 }
  0x65   : > { %1245 = dma.done.wait (%p1561_p12), [#allocation9], 1024   ;;  %p1562_p2 = pmov %p1559_p5 }
  0x66   : > { %v1064_v0 = vld [vmem:[#allocation5 + $0x38] sm:$0xff]   ;;  %v1065_v1 = vld [vmem:[#allocation5 + $0x30] sm:$0xff]   ;;  %v1066_v2 = vld [vmem:[#allocation5 + $0x28] sm:$0xff]   ;;  %s340_s21 = scalar_lea.vmem [#allocation10], %s852_s1  ;;  %s890_s12 = sshll.u32 %s1340_s28, 9 }
  0x67   : > { %1247 = vsyncadd (%p1562_p2), [#allocation9], 4294966272  ;;  %921 = vmatprep.subr.bf16.mxu0 %v1064_v0  ;;  %v1067_v3 = vld [vmem:[#allocation5 + $0x20] sm:$0xff]   ;;  %v345_v5 = vld [vmem:[%s1459_s19 + $0x8] sm:$0xff]  ;;  %s740_s29 = sshll.u32 %s340_s21, 4  ;;  %s1494_s18 = scalar_lea.hbm %s1543_s7, %s890_s12  ;;  %s1489_s29 = int_to_ptr.vmem [resolvable:$true] %s740_s29 }
  0x68   : > { %922 = vmatpush3.bf16.msra.mxu0 %v1064_v0  ;;  %v344_v4 = vld [vmem:[%s1459_s19] sm:$0xff]  ;;  %v1072_v7 = vld [vmem:[#allocation7 + $0x38] sm:$0xff]   ;;  %v1073_v8 = vld [vmem:[#allocation7 + $0x30] sm:$0xff]   ;;  %s727_s1 = scalar_lea.sflag [#allocation4], %s1453_s16  ;;  %p1563_p6 = scmp.ne.s32.totalorder %s1555_s20, 0 }
  0x69   : > { %923 = vmatprep.subr.bf16.mxu0 %v1065_v1  ;;  %v348_v6 = vpack.c.bf16 %v345_v5, %v344_v4  ;;  %v1068_v9 = vld [vmem:[#allocation5 + $0x18] sm:$0xff]   ;;  %941 = vmatprep.subr.bf16.mxu1 %v1072_v7  ;;  %v1069_v10 = vld [vmem:[#allocation5 + $0x10] sm:$0xff]   ;;  %v1074_v11 = vld [vmem:[#allocation7 + $0x28] sm:$0xff]   ;;  %s1276_s28 = smov [#allocation10]  }
  0x6a   : > { %942 = vmatpush3.bf16.msra.mxu1 %v1072_v7  ;;  %v1075_v12 = vld [vmem:[#allocation7 + $0x20] sm:$0xff]   ;;  %v1070_v13 = vld [vmem:[#allocation5 + $0x8] sm:$0xff]   ;;  %v1076_v14 = vld [vmem:[#allocation7 + $0x18] sm:$0xff]   ;;  %s1198_s30 = sshll.u32 %s1276_s28, 4  ;;  %s1199_s30 = int_to_ptr.vmem [resolvable:$false] %s1198_s30 }
  0x6b   : > { %937 = vmatprep.mubr.bf16.mxu0 %v348_v6  ;;  %943 = vmatprep.subr.bf16.mxu1 %v1073_v8  ;;  %v1071_v15 = vld [vmem:[#allocation5] sm:$0xff]   ;;  %v346_v16 = vld [vmem:[%s1459_s19 + $0x10] sm:$0xff]  ;;  %v347_v17 = vld [vmem:[%s1459_s19 + $0x18] sm:$0xff]  ;;  %s1194_s19 = scalar_lea.vmem %s1489_s29, 512  ;;  %s1200_s9 = scalar_lea.vmem %s1199_s30, 1024 }
  0x6c   : > { %924 = vmatpush3.bf16.msra.mxu0 %v1065_v1  ;;  %v349_v18 = vpack.c.bf16 %v347_v17, %v346_v16  ;;  %v1077_v19 = vld [vmem:[#allocation7 + $0x10] sm:$0xff]   ;;  %v1078_v20 = vld [vmem:[#allocation7 + $0x8] sm:$0xff]   ;;  %v1079_v21 = vld [vmem:[#allocation7] sm:$0xff]   ;;  %p1195_p4 = scmp.ne.s32.totalorder %s1489_s29, %s1194_s19  ;;  %p1201_p3 = scmp.lt.s32.totalorder %s1489_s29, %s1199_s30 }
  0x6d   : > { %925 = vmatprep.subr.bf16.mxu0 %v1066_v2  ;;  %v1080_v22 = vld [vmem:[#allocation8 + $0x38] sm:$0xff]   ;;  %v1081_v23 = vld [vmem:[#allocation8 + $0x30] sm:$0xff]   ;;  %v1082_v24 = vld [vmem:[#allocation8 + $0x28] sm:$0xff]   ;;  %p1202_p0 = scmp.lt.s32.totalorder %s1200_s9, %s1194_s19 }
  0x6e   : > { %944 = vmatpush3.bf16.msra.mxu1 %v1073_v8  ;;  %v1083_v25 = vld [vmem:[#allocation8 + $0x20] sm:$0xff]   ;;  %v1084_v26 = vld [vmem:[#allocation8 + $0x18] sm:$0xff]   ;;  %v1085_v42 = vld [vmem:[#allocation8 + $0x10] sm:$0xff]   ;;  %p1196_p11 = pnand %p1195_p4, %p1563_p6 }
  0x6f   : > { %945 = vmatprep.subr.bf16.mxu1 %v1074_v11  ;;  %v857_v29 = vld [vmem:[%s1538_s2] ss:$0 sm:$0xff]  ;;  %v1086_v43 = vld [vmem:[#allocation8 + $0x8] sm:$0xff]   ;;  %p1203_p7 = por %p1202_p0, %p1201_p3 }
  0x70   : > { %926 = vmatpush3.bf16.msra.mxu0 %v1066_v2  ;;  %v1087_v44 = vld [vmem:[#allocation8] sm:$0xff]   ;;  %p1197_p13 = pneg %p1196_p11 }
  0x71   : > { %927 = vmatprep.subr.bf16.mxu0 %v1067_v3  ;;  %v866_v47 = vld [vmem:[%s1540_s4] ss:$0 sm:$0xff] }
  0x72   : > { %946 = vmatpush3.bf16.msra.mxu1 %v1074_v11  ;;  %v875_v60 = vld [vmem:[%s1542_s6] ss:$0 sm:$0xff]  ;;  %p1204_p9 = pnand %p1203_p7, %p1197_p13 }
  0x73   : > { %947 = vmatprep.subr.bf16.mxu1 %v1075_v12 }
  0x74   : > { %928 = vmatpush3.bf16.msra.mxu0 %v1067_v3 }
  0x75   : > { %929 = vmatprep.subr.bf16.mxu0 %v1068_v9 }
  0x76   : > { %948 = vmatpush3.bf16.msra.mxu1 %v1075_v12 }
  0x77   : > { %949 = vmatprep.subr.bf16.mxu1 %v1076_v14 }
  0x78   : > { %930 = vmatpush3.bf16.msra.mxu0 %v1068_v9 }
  0x79   : > { %931 = vmatprep.subr.bf16.mxu0 %v1069_v10 }
  0x7a   : > { %950 = vmatpush3.bf16.msra.mxu1 %v1076_v14 }
  0x7b   : > { %951 = vmatprep.subr.bf16.mxu1 %v1077_v19 }
  0x7c   : > { %932 = vmatpush3.bf16.msra.mxu0 %v1069_v10 }
  0x7d   : > { %933 = vmatprep.subr.bf16.mxu0 %v1070_v13 }
  0x7e   : > { %952 = vmatpush3.bf16.msra.mxu1 %v1077_v19 }
  0x7f   : > { %953 = vmatprep.subr.bf16.mxu1 %v1078_v20 }
  0x80   : > { %934 = vmatpush3.bf16.msra.mxu0 %v1070_v13 }
  0x81   : > { %935 = vmatprep.subr.bf16.mxu0 %v1071_v15 }
  0x82   : > { %954 = vmatpush3.bf16.msra.mxu1 %v1078_v20 }
  0x83   : > { %955 = vmatprep.subr.bf16.mxu1 %v1079_v21 }
  0x84   : > { %936 = vmatpush3.bf16.msra.mxu0 %v1071_v15 }
  0x85   : > { %961 = vmatprep.subr.bf16.mxu0 %v1080_v22 }
  0x86   : > { %956 = vmatpush3.bf16.msra.mxu1 %v1079_v21 }
  0x87   : > { %938 = vmatmul.mubr.bf16.vlgmr.msra.gmra.mxu0 %v349_v18 }
  0x88   : > { %962 = vmatpush3.bf16.msra.mxu0 %v1080_v22 }
  0x89   : > { %963 = vmatprep.subr.bf16.mxu0 %v1081_v23 }
  0x8c   : > { %964 = vmatpush3.bf16.msra.mxu0 %v1081_v23 }
  0x8d   : > { %965 = vmatprep.subr.bf16.mxu0 %v1082_v24 }
  0x90   : > { %966 = vmatpush3.bf16.msra.mxu0 %v1082_v24 }
  0x91   : > { %967 = vmatprep.subr.bf16.mxu0 %v1083_v25 }
  0x94   : > { %968 = vmatpush3.bf16.msra.mxu0 %v1083_v25 }
  0x95   : > { %969 = vmatprep.subr.bf16.mxu0 %v1084_v26 }
  0x98   : > { %970 = vmatpush3.bf16.msra.mxu0 %v1084_v26 }
  0x99   : > { %971 = vmatprep.subr.bf16.mxu0 %v1085_v42 }
  0x9c   : > { %972 = vmatpush3.bf16.msra.mxu0 %v1085_v42 }
  0x9d   : > { %973 = vmatprep.subr.bf16.mxu0 %v1086_v43 }
  0xa0   : > { %974 = vmatpush3.bf16.msra.mxu0 %v1086_v43 }
  0xa1   : > { %975 = vmatprep.subr.bf16.mxu0 %v1087_v44 }
  0xa4   : > { %976 = vmatpush3.bf16.msra.mxu0 %v1087_v44 }
 0x147   : > { %v939_v27 = vpop.f32.mrf.mxu0 }
 0x148   : > { %v464_v33 = vadd.f32 %v939_v27, %v857_v29 }
 0x149   : > { %v455_v28 = vpop.f32.mrf.mxu0 }
 0x14a   : > { %v456_v31 = vadd.f32 %v857_v29, %v455_v28  ;;  %v472_v39 = vmax.f32 %v464_v33, 0.0 }
 0x14b   : > { %v940_v30 = vpop.f32.mrf.mxu0 }
 0x14c   : > { %v467_v32 = vadd.f32 %v940_v30, %v857_v29  ;;  %v470_v37 = vmax.f32 %v456_v31, 0.0 }
 0x14d   : > { %v458_v34 = vpop.f32.mrf.mxu0 }
 0x14e   : > { %v459_v35 = vadd.f32 %v857_v29, %v458_v34  ;;  %v473_v36 = vmax.f32 %v467_v32, 0.0 }
 0x150   : > { %v471_v38 = vmax.f32 %v459_v35, 0.0  ;;  %v475_v41 = vpack.c.bf16 %v473_v36, %v472_v39 }
 0x152   : > { %v474_v40 = vpack.c.bf16 %v471_v38, %v470_v37 }
 0x154   : > { %957 = vmatprep.mubr.bf16.mxu1 %v474_v40 }
 0x155   : > { %958 = vmatmul.mubr.bf16.vlgmr.msra.gmra.mxu1 %v475_v41 }
 0x215   : > { %v959_v45 = vpop.f32.mrf.mxu1 }
 0x216   : > { %v590_v51 = vadd.f32 %v959_v45, %v866_v47 }
 0x217   : > { %v581_v46 = vpop.f32.mrf.mxu1 }
 0x218   : > { %v582_v49 = vadd.f32 %v866_v47, %v581_v46  ;;  %v598_v57 = vmax.f32 %v590_v51, 0.0 }
 0x219   : > { %v960_v48 = vpop.f32.mrf.mxu1 }
 0x21a   : > { %v593_v50 = vadd.f32 %v960_v48, %v866_v47  ;;  %v596_v55 = vmax.f32 %v582_v49, 0.0 }
 0x21b   : > { %v584_v52 = vpop.f32.mrf.mxu1 }
 0x21c   : > { %v585_v53 = vadd.f32 %v866_v47, %v584_v52  ;;  %v599_v54 = vmax.f32 %v593_v50, 0.0 }
 0x21e   : > { %v597_v56 = vmax.f32 %v585_v53, 0.0  ;;  %v601_v59 = vpack.c.bf16 %v599_v54, %v598_v57 }
 0x220   : > { %v600_v58 = vpack.c.bf16 %v597_v56, %v596_v55 }
 0x222   : > { %977 = vmatprep.mubr.bf16.mxu0 %v600_v58 }
 0x223   : > { %978 = vmatmul.mubr.bf16.vlgmr.msra.gmra.mxu0 %v601_v59 }
 0x2e3   : > { %v979_v61 = vpop.f32.mrf.mxu0 }
 0x2e4   : > { %v716_v62 = vadd.f32 %v979_v61, %v875_v60 }
 0x2e5   : > { %v707_v63 = vpop.f32.mrf.mxu0 }
 0x2e6   : > { %724 = vst [vmem:[%s340_s21 + $0x10] sm:$0xff] %v716_v62  ;;  %v708_v0 = vadd.f32 %v875_v60, %v707_v63 }
 0x2e7   : > { %v980_v1 = vpop.f32.mrf.mxu0 }
 0x2e8   : > { %722 = vst [vmem:[%s340_s21] sm:$0xff] %v708_v0  ;;  %v719_v2 = vadd.f32 %v980_v1, %v875_v60 }
 0x2e9   : > { %v710_v3 = vpop.f32.mrf.mxu0 }
 0x2ea   : > { %725 = vst [vmem:[%s340_s21 + $0x18] sm:$0xff] %v719_v2  ;;  %v711_v4 = vadd.f32 %v875_v60, %v710_v3 }
 0x2ec   : > { %723 = vst [vmem:[%s340_s21 + $0x8] sm:$0xff] %v711_v4 }
 0x2ed   : > { %1207 = shalt.err (!%p1204_p9)
}
 0x2ee   : > { %s1208_s23 = scalar_lea.hbm %s1494_s18, 512  ;;  %s1212_s13 = scalar_lea.hbm %s1543_s7, 2048 }
 0x2ef   : > { %p1209_p1 = scmp.ne.s32.totalorder %s1494_s18, %s1208_s23  ;;  %p1213_p10 = scmp.lt.s32.totalorder %s1494_s18, %s1543_s7 }
 0x2f0   : > { %p1214_p12 = scmp.lt.s32.totalorder %s1212_s13, %s1208_s23 }
 0x2f1   : > { %p1210_p8 = pnand %p1209_p1, %p1563_p6 }
 0x2f2   : > { %p1215_p2 = por %p1214_p12, %p1213_p10 }
 0x2f3   : > { %p1211_p5 = pneg %p1210_p8 }
 0x2f5   : > { %p1216_p4 = pnand %p1215_p2, %p1211_p5 }
 0x2f7   : > { %1219 = shalt.err (!%p1216_p4)
}
 0x2f8   : > { %s1277_s15 = smov 128   ;;  %s1278_s22 = smov 8  }
 0x2f9   : > { %995 = dma.vmem_to_hbm [thread:$0]  (%p1563_p6), %s1489_s29, 512, %s1494_s18, %s727_s1, %s1277_s15, %s1277_s15, %s1278_s22  }
 0x2fa PF: > { %p1022_p11 = scmp.ge.s32.totalorder %s1266_s27, 2  ;;  %s755_s19 = sand.u32 1, %s1254_s24  }
 0x2fb   : > { %p1564_p13 = scmp.ne.s32.totalorder %s1550_s8, 0  ;;  %s756_s28 = scalar_lea.sflag [#allocation4], %s755_s19 }
 0x2fd   : > { %p1012_p3 = pnand %p1022_p11, %p1564_p13 }
 0x2ff   : > { %p1013_p0 = pneg %p1012_p3 }
 0x301   : > { %1249 = dma.done.wait (%p1013_p0), %s756_s28, 512  }
 0x302   : > { %1251 = vsyncadd (%p1013_p0), %s756_s28, 4294966784  ;;  %p22_p7 = scmp.ge.s32.totalorder %s1398_s14, 6   ;;  %s1565_s24 = smov %s1258_s25 }
 0x303   : > { %s1566_s25 = smov %s1262_s26  ;;  %s1567_s26 = smov %s1408_s17 }
 0x304   : > { %s1568_s27 = smov %s1398_s14  ;;  %24 = sbr.rel (!%p22_p7) target bundleno = 9 (0x9), region = 105 }
 0x309   :  { %761 = vsyncpa [#allocation3], 1 }
 0x30a   :  { %763 = vsyncpa [#allocation3 + $0x1], 1 }
 0x30b   :  { %764 = vsyncpa [#allocation6], 1 }
 0x30c   :  { %765 = vsyncpa [#allocation9], 1 }
 0x30d   :  { %766 = vsyncpa [#allocation4], 1 }
 0x30e   :  { %768 = vsyncpa [#allocation4 + $0x1], 1 }

// kernel: tpu_custom_call.1
= control target key start
LH: loop header
LB: loop body
LE: loop exit
PB: predicated region body
PF: predicated region fallthrough
CT: control target
= control target key end

     0   :  { %s1536_s0 = inlined_call_operand.hbm [shape: f32[128,128], index: 0, kind: input, shape index: {}]   ;;  %s1537_s1 = inlined_call_operand.hbm [shape: bf16[128,128], index: 1, kind: input, shape index: {}]   ;;  %s1538_s2 = inlined_call_operand.vmem [shape: f32[1,128], index: 2, kind: input, shape index: {}]   ;;  %s1539_s3 = inlined_call_operand.hbm [shape: bf16[128,128], index: 3, kind: input, shape index: {}]   ;;  %s1540_s4 = inlined_call_operand.vmem [shape: f32[1,128], index: 4, kind: input, shape index: {}]   ;;  %s1541_s5 = inlined_call_operand.hbm [shape: bf16[128,128], index: 5, kind: input, shape index: {}]   ;;  %s1542_s6 = inlined_call_operand.vmem [shape: f32[1,128], index: 6, kind: input, shape index: {}]   ;;  %s1543_s7 = inlined_call_operand.hbm [shape: f32[128,128], index: 7, kind: output, shape index: {}]  }
   0x1   :  { %1548 = sst [smem:[#allocation15_spill]] %s1537_s1 }
   0x2   :  { %12 = vsyncpa [#allocation3], 0 }
   0x3   :  { %14 = vsyncpa [#allocation3 + $0x1], 0 }
   0x4   :  { %15 = vsyncpa [#allocation6], 0 }
   0x5   :  { %16 = vsyncpa [#allocation9], 0 }
   0x6   :  { %17 = vsyncpa [#allocation4], 0 }
   0x7   :  { %19 = vsyncpa [#allocation4 + $0x1], 0  ;;  %s1319_s24 = smov 0   ;;  %s1321_s25 = smov 0  }
   0x8   :  { %s1323_s26 = smov 0   ;;  %s1325_s27 = smov 0  }
   0x9 LB: > { %s1340_s28 = sadd.s32 4294967295, %s1266_s27   ;;  %s842_s29 = sadd.s32 4294967294, %s1266_s27   ;;  %s1266_s27 = sphi %s1325_s27, %s1568_s27   ;;  %s1262_s26 = sphi %s1323_s26, %s1567_s26   ;;  %s1258_s25 = sphi %s1321_s25, %s1566_s25   ;;  %s1254_s24 = sphi %s1319_s24, %s1565_s24  }
   0xa   : > { %p45_p0 = scmp.ne.s32.totalorder %s1258_s25, %s1254_s24  ;;  %p1544_p1 = scmp.eq.s32.totalorder %s1340_s28, 0 }
   0xb   : > { %p201_p3 = scmp.eq.s32.totalorder %s842_s29, 3  ;;  %p843_p5 = scmp.ge.s32.totalorder %s1266_s27, 1 }
   0xc   : > { %p1349_p4 = por %p1544_p1, %p45_p0  ;;  %p208_p7 = scmp.lt.s32.totalorder %s1266_s27, 5 }
   0xd   : > { %p1354_p6 = por %p201_p3, %p45_p0  ;;  %s1268_s10 = smov [#allocation5]  }
   0xe   : > { %s1549_s30 = scalar_select %p1349_p4, 1, 0 }
   0xf   : > { %s1550_s8 = scalar_select %p1354_p6, 1, 0 }
  0x10   : > { %p1359_p8 = pnand %p843_p5, %p208_p7  ;;  %s220_s11 = sshll.u32 %s1268_s10, 4  ;;  %s221_s11 = int_to_ptr.vmem [resolvable:$true] %s220_s11 }
  0x11   : > { %s1269_s13 = smov [#allocation7]   ;;  %s1270_s15 = smov [#allocation8]  }
  0x12   : > { %s1551_s9 = scalar_select %p1359_p8, 1, 0 }
  0x13   : > { %p997_p9 = pneg %p1359_p8  ;;  %s236_s14 = sshll.u32 %s1269_s13, 4  ;;  %s237_s14 = int_to_ptr.vmem [resolvable:$true] %s236_s14 }
  0x14   : > { %s252_s16 = sshll.u32 %s1270_s15, 4  ;;  %s1099_s17 = scalar_lea.vmem %s221_s11, 1024  ;;  %s253_s16 = int_to_ptr.vmem [resolvable:$true] %s252_s16 }
  0x15   : > { %p1367_p10 = pnand %p997_p9, %p1544_p1  ;;  %p1100_p12 = scmp.ne.s32.totalorder %s221_s11, %s1099_s17 }
  0x16   : > { %p1107_p3 = scmp.lt.s32.totalorder %s221_s11, %s221_s11  ;;  %p1108_p5 = scmp.lt.s32.totalorder %s1099_s17, %s1099_s17 }
  0x17   : > { %p1090_p11 = pneg %p1367_p10 }
  0x18   : > { %p1109_p7 = por %p1108_p5, %p1107_p3 }
  0x19   : > { %p1102_p13 = pnand %p1100_p12, %p1090_p11 }
  0x1b   : > { %p1103_p0 = pneg %p1102_p13 }
  0x1d   : > { %p1110_p9 = pnand %p1109_p7, %p1103_p0 }
  0x1f   : > { %1113 = shalt.err (!%p1110_p9)
}
  0x20   : > { %s1271_s18 = smov 64   ;;  %s1272_s19 = smov 4  }
  0x21   : > { %s1553_s1 = sld [smem:[#allocation15_spill]]  ;;  %s1125_s22 = scalar_lea.vmem %s237_s14, 1024 }
  0x22   : > { %p1126_p1 = scmp.ne.s32.totalorder %s237_s14, %s1125_s22  ;;  %p1133_p2 = scmp.lt.s32.totalorder %s237_s14, %s237_s14 }
  0x23   : > { %p1134_p6 = scmp.lt.s32.totalorder %s1125_s22, %s1125_s22 }
  0x24   : > { %p1128_p12 = pnand %p1126_p1, %p1090_p11 }
  0x25   : > { %p1135_p3 = por %p1134_p6, %p1133_p2 }
  0x26   : > { %p1129_p13 = pneg %p1128_p12 }
  0x27   : > { %1000 = dma.hbm_to_vmem [thread:$0]  (!%p1367_p10), %s1553_s1, 1024, %s221_s11, [#allocation6], %s1271_s18, %s1271_s18, %s1272_s19  }
  0x28   : > { %p1136_p0 = pnand %p1135_p3, %p1129_p13 }
  0x2a   : > { %1139 = shalt.err (!%p1136_p0)
}
  0x2b   : > { %1003 = dma.hbm_to_vmem [thread:$0]  (!%p1367_p10), %s1539_s3, 1024, %s237_s14, [#allocation6], %s1271_s18, %s1271_s18, %s1272_s19  }
  0x2c   : > { %s1151_s10 = scalar_lea.vmem %s253_s16, 1024  ;;  %p1159_p9 = scmp.lt.s32.totalorder %s253_s16, %s253_s16 }
  0x2d   : > { %p1152_p5 = scmp.ne.s32.totalorder %s253_s16, %s1151_s10  ;;  %p1160_p12 = scmp.lt.s32.totalorder %s1151_s10, %s1151_s10 }
  0x2f   : > { %p1154_p7 = pnand %p1152_p5, %p1090_p11  ;;  %p1161_p4 = por %p1160_p12, %p1159_p9 }
  0x31   : > { %p1155_p1 = pneg %p1154_p7 }
  0x33   : > { %p1162_p2 = pnand %p1161_p4, %p1155_p1 }
  0x35   : > { %1165 = shalt.err (!%p1162_p2)
}
  0x36   : > { %1006 = dma.hbm_to_vmem [thread:$0]  (!%p1367_p10), %s1541_s5, 1024, %s253_s16, [#allocation9], %s1271_s18, %s1271_s18, %s1272_s19  }
  0x37   : > { %s1398_s14 = sadd.s32 1, %s1266_s27   ;;  %s32_s12 = sadd.s32 1, %s1262_s26 }
  0x38   : > { %s29_s15 = ssub.s32 %s1266_s27, %s1398_s14  ;;  %p39_p6 = scmp.ne.s32.totalorder %s1262_s26, %s1258_s25 }
  0x39   : > { %p30_p4 = scmp.eq.s32.totalorder %s29_s15, 0  ;;  %p40_p11 = scmp.eq.s32.totalorder %s1266_s27, 0 }
  0x3a   : > { %p1018_p13 = scmp.lt.s32.totalorder %s1266_s27, 4  ;;  %p1554_p0 = scmp.eq.s32.totalorder %s1340_s28, 3 }
  0x3b   : > { %s1408_s17 = scalar_select %p30_p4, %s1262_s26, %s32_s12  }
  0x3c   : > { %p41_p3 = por %p40_p11, %p39_p6  ;;  %p1412_p5 = por %p1554_p0, %p39_p6 }
  0x3d   : > { %s269_s21 = sand.u32 1, %s1262_s26   ;;  %s889_s22 = sshll.u32 %s1266_s27, 9 }
  0x3e   : > { %s1555_s20 = scalar_select %p1412_p5, 1, 0 }
  0x3f   : > { %s848_s16 = sshll.u32 %s269_s21, 5  ;;  %s1421_s23 = scalar_lea.hbm %s1536_s0, %s889_s22 }
  0x40   : > { %s273_s29 = scalar_lea.vmem [#allocation2], %s848_s16  ;;  %p1423_p10 = pnand %p1018_p13, %p41_p3 }
  0x41   : > { %s280_s10 = sshll.u32 %s273_s29, 4  ;;  %s1429_s13 = scalar_lea.sflag [#allocation3], %s269_s21  ;;  %s1427_s10 = int_to_ptr.vmem [resolvable:$true] %s280_s10 }
  0x42   : > { %s1166_s15 = scalar_lea.hbm %s1421_s23, 512  ;;  %p1168_p1 = pneg %p1423_p10 }
  0x43   : > { %p1167_p7 = scmp.ne.s32.totalorder %s1421_s23, %s1166_s15  ;;  %s1171_s16 = scalar_lea.hbm %s1536_s0, 2048 }
  0x44   : > { %p1172_p2 = scmp.lt.s32.totalorder %s1421_s23, %s1536_s0  ;;  %p1173_p4 = scmp.lt.s32.totalorder %s1171_s16, %s1166_s15 }
  0x45   : > { %p1169_p9 = pnand %p1168_p1, %p1167_p7 }
  0x46   : > { %p1174_p6 = por %p1173_p4, %p1172_p2 }
  0x47   : > { %p1170_p12 = pneg %p1169_p9 }
  0x49   : > { %p1175_p11 = pnand %p1174_p6, %p1170_p12 }
  0x4b   : > { %1178 = shalt.err (!%p1175_p11)
}
  0x4c   : > { %s1179_s21 = scalar_lea.vmem %s1427_s10, 512  ;;  %s1273_s29 = smov [#allocation2]  }
  0x4d   : > { %p1180_p13 = scmp.ne.s32.totalorder %s1427_s10, %s1179_s21  ;;  %s1184_s1 = sshll.u32 %s1273_s29, 4  ;;  %s1185_s1 = int_to_ptr.vmem [resolvable:$false] %s1184_s1 }
  0x4e   : > { %s1186_s12 = scalar_lea.vmem %s1185_s1, 1024  ;;  %p1187_p7 = scmp.lt.s32.totalorder %s1427_s10, %s1185_s1 }
  0x4f   : > { %p1182_p3 = pnand %p1180_p13, %p1168_p1  ;;  %p1188_p9 = scmp.lt.s32.totalorder %s1186_s12, %s1179_s21 }
  0x51   : > { %p1183_p0 = pneg %p1182_p3  ;;  %p1189_p5 = por %p1188_p9, %p1187_p7 }
  0x53   : > { %p1190_p8 = pnand %p1189_p5, %p1183_p0 }
  0x55   : > { %1193 = shalt.err (!%p1190_p8)
}
  0x56   : > { %s1274_s15 = smov 128   ;;  %s1275_s22 = smov 8  }
  0x57   : > { %1010 = dma.hbm_to_vmem [thread:$0]  (!%p1423_p10), %s1421_s23, 512, %s1427_s10, %s1429_s13, %s1274_s15, %s1274_s15, %s1275_s22  }
  0x58   : > { %p1557_p1 = scmp.ne.s32.totalorder %s1551_s9, 0 }
  0x59   : > { %s1453_s16 = sand.u32 (!%p1557_p1), 1, %s1258_s25   ;;  %p1558_p8 = scmp.ne.s32.totalorder (!%p1557_p1), %s1549_s30, 0 }
  0x5a   : > { %292 = sbr.rel (%p1557_p1) target bundleno = 762 (0x2fa), region = 48  ;;  %s852_s1 = sshll.u32 (!%p1557_p1), %s1453_s16, 5 }
  0x5b   : > { %s295_s18 = scalar_lea.sflag (!%p1557_p1), [#allocation3], %s1453_s16  ;;  %s1459_s19 = scalar_lea.vmem (!%p1557_p1), [#allocation2], %s852_s1 }
  0x5f   : > { %1237 = dma.done.wait (%p1558_p8), %s295_s18, 512  }
  0x60   : > { %1239 = vsyncadd (%p1558_p8), %s295_s18, 4294966784  ;;  %p1559_p5 = scmp.eq.s32.totalorder %s1340_s28, 0 }
  0x62   : > { %1241 = dma.done.wait (%p1559_p5), [#allocation6], 2048   ;;  %p1560_p10 = pmov %p1559_p5 }
  0x63   : > { %p1561_p12 = pmov %p1559_p5 }
  0x64   : > { %1243 = vsyncadd (%p1560_p10), [#allocation6], 4294965248 }
  0x65   : > { %1245 = dma.done.wait (%p1561_p12), [#allocation9], 1024   ;;  %p1562_p2 = pmov %p1559_p5 }
  0x66   : > { %v1064_v0 = vld [vmem:[#allocation5 + $0x38] sm:$0xff]   ;;  %v1065_v1 = vld [vmem:[#allocation5 + $0x30] sm:$0xff]   ;;  %v1066_v2 = vld [vmem:[#allocation5 + $0x28] sm:$0xff]   ;;  %s340_s21 = scalar_lea.vmem [#allocation10], %s852_s1  ;;  %s890_s12 = sshll.u32 %s1340_s28, 9 }
  0x67   : > { %1247 = vsyncadd (%p1562_p2), [#allocation9], 4294966272  ;;  %921 = vmatprep.subr.bf16.mxu0 %v1064_v0  ;;  %v1067_v3 = vld [vmem:[#allocation5 + $0x20] sm:$0xff]   ;;  %v345_v5 = vld [vmem:[%s1459_s19 + $0x8] sm:$0xff]  ;;  %s740_s29 = sshll.u32 %s340_s21, 4  ;;  %s1494_s18 = scalar_lea.hbm %s1543_s7, %s890_s12  ;;  %s1489_s29 = int_to_ptr.vmem [resolvable:$true] %s740_s29 }
  0x68   : > { %922 = vmatpush3.bf16.msra.mxu0 %v1064_v0  ;;  %v344_v4 = vld [vmem:[%s1459_s19] sm:$0xff]  ;;  %v1072_v7 = vld [vmem:[#allocation7 + $0x38] sm:$0xff]   ;;  %v1073_v8 = vld [vmem:[#allocation7 + $0x30] sm:$0xff]   ;;  %s727_s1 = scalar_lea.sflag [#allocation4], %s1453_s16  ;;  %p1563_p6 = scmp.ne.s32.totalorder %s1555_s20, 0 }
  0x69   : > { %923 = vmatprep.subr.bf16.mxu0 %v1065_v1  ;;  %v348_v6 = vpack.c.bf16 %v345_v5, %v344_v4  ;;  %v1068_v9 = vld [vmem:[#allocation5 + $0x18] sm:$0xff]   ;;  %941 = vmatprep.subr.bf16.mxu1 %v1072_v7  ;;  %v1069_v10 = vld [vmem:[#allocation5 + $0x10] sm:$0xff]   ;;  %v1074_v11 = vld [vmem:[#allocation7 + $0x28] sm:$0xff]   ;;  %s1276_s28 = smov [#allocation10]  }
  0x6a   : > { %942 = vmatpush3.bf16.msra.mxu1 %v1072_v7  ;;  %v1075_v12 = vld [vmem:[#allocation7 + $0x20] sm:$0xff]   ;;  %v1070_v13 = vld [vmem:[#allocation5 + $0x8] sm:$0xff]   ;;  %v1076_v14 = vld [vmem:[#allocation7 + $0x18] sm:$0xff]   ;;  %s1198_s30 = sshll.u32 %s1276_s28, 4  ;;  %s1199_s30 = int_to_ptr.vmem [resolvable:$false] %s1198_s30 }
  0x6b   : > { %937 = vmatprep.mubr.bf16.mxu0 %v348_v6  ;;  %943 = vmatprep.subr.bf16.mxu1 %v1073_v8  ;;  %v1071_v15 = vld [vmem:[#allocation5] sm:$0xff]   ;;  %v346_v16 = vld [vmem:[%s1459_s19 + $0x10] sm:$0xff]  ;;  %v347_v17 = vld [vmem:[%s1459_s19 + $0x18] sm:$0xff]  ;;  %s1194_s19 = scalar_lea.vmem %s1489_s29, 512  ;;  %s1200_s9 = scalar_lea.vmem %s1199_s30, 1024 }
  0x6c   : > { %924 = vmatpush3.bf16.msra.mxu0 %v1065_v1  ;;  %v349_v18 = vpack.c.bf16 %v347_v17, %v346_v16  ;;  %v1077_v19 = vld [vmem:[#allocation7 + $0x10] sm:$0xff]   ;;  %v1078_v20 = vld [vmem:[#allocation7 + $0x8] sm:$0xff]   ;;  %v1079_v21 = vld [vmem:[#allocation7] sm:$0xff]   ;;  %p1195_p4 = scmp.ne.s32.totalorder %s1489_s29, %s1194_s19  ;;  %p1201_p3 = scmp.lt.s32.totalorder %s1489_s29, %s1199_s30 }
  0x6d   : > { %925 = vmatprep.subr.bf16.mxu0 %v1066_v2  ;;  %v1080_v22 = vld [vmem:[#allocation8 + $0x38] sm:$0xff]   ;;  %v1081_v23 = vld [vmem:[#allocation8 + $0x30] sm:$0xff]   ;;  %v1082_v24 = vld [vmem:[#allocation8 + $0x28] sm:$0xff]   ;;  %p1202_p0 = scmp.lt.s32.totalorder %s1200_s9, %s1194_s19 }
  0x6e   : > { %944 = vmatpush3.bf16.msra.mxu1 %v1073_v8  ;;  %v1083_v25 = vld [vmem:[#allocation8 + $0x20] sm:$0xff]   ;;  %v1084_v26 = vld [vmem:[#allocation8 + $0x18] sm:$0xff]   ;;  %v1085_v42 = vld [vmem:[#allocation8 + $0x10] sm:$0xff]   ;;  %p1196_p11 = pnand %p1195_p4, %p1563_p6 }
  0x6f   : > { %945 = vmatprep.subr.bf16.mxu1 %v1074_v11  ;;  %v857_v29 = vld [vmem:[%s1538_s2] ss:$0 sm:$0xff]  ;;  %v1086_v43 = vld [vmem:[#allocation8 + $0x8] sm:$0xff]   ;;  %p1203_p7 = por %p1202_p0, %p1201_p3 }
  0x70   : > { %926 = vmatpush3.bf16.msra.mxu0 %v1066_v2  ;;  %v1087_v44 = vld [vmem:[#allocation8] sm:$0xff]   ;;  %p1197_p13 = pneg %p1196_p11 }
  0x71   : > { %927 = vmatprep.subr.bf16.mxu0 %v1067_v3  ;;  %v866_v47 = vld [vmem:[%s1540_s4] ss:$0 sm:$0xff] }
  0x72   : > { %946 = vmatpush3.bf16.msra.mxu1 %v1074_v11  ;;  %v875_v60 = vld [vmem:[%s1542_s6] ss:$0 sm:$0xff]  ;;  %p1204_p9 = pnand %p1203_p7, %p1197_p13 }
  0x73   : > { %947 = vmatprep.subr.bf16.mxu1 %v1075_v12 }
  0x74   : > { %928 = vmatpush3.bf16.msra.mxu0 %v1067_v3 }
  0x75   : > { %929 = vmatprep.subr.bf16.mxu0 %v1068_v9 }
  0x76   : > { %948 = vmatpush3.bf16.msra.mxu1 %v1075_v12 }
  0x77   : > { %949 = vmatprep.subr.bf16.mxu1 %v1076_v14 }
  0x78   : > { %930 = vmatpush3.bf16.msra.mxu0 %v1068_v9 }
  0x79   : > { %931 = vmatprep.subr.bf16.mxu0 %v1069_v10 }
  0x7a   : > { %950 = vmatpush3.bf16.msra.mxu1 %v1076_v14 }
  0x7b   : > { %951 = vmatprep.subr.bf16.mxu1 %v1077_v19 }
  0x7c   : > { %932 = vmatpush3.bf16.msra.mxu0 %v1069_v10 }
  0x7d   : > { %933 = vmatprep.subr.bf16.mxu0 %v1070_v13 }
  0x7e   : > { %952 = vmatpush3.bf16.msra.mxu1 %v1077_v19 }
  0x7f   : > { %953 = vmatprep.subr.bf16.mxu1 %v1078_v20 }
  0x80   : > { %934 = vmatpush3.bf16.msra.mxu0 %v1070_v13 }
  0x81   : > { %935 = vmatprep.subr.bf16.mxu0 %v1071_v15 }
  0x82   : > { %954 = vmatpush3.bf16.msra.mxu1 %v1078_v20 }
  0x83   : > { %955 = vmatprep.subr.bf16.mxu1 %v1079_v21 }
  0x84   : > { %936 = vmatpush3.bf16.msra.mxu0 %v1071_v15 }
  0x85   : > { %961 = vmatprep.subr.bf16.mxu0 %v1080_v22 }
  0x86   : > { %956 = vmatpush3.bf16.msra.mxu1 %v1079_v21 }
  0x87   : > { %938 = vmatmul.mubr.bf16.vlgmr.msra.gmra.mxu0 %v349_v18 }
  0x88   : > { %962 = vmatpush3.bf16.msra.mxu0 %v1080_v22 }
  0x89   : > { %963 = vmatprep.subr.bf16.mxu0 %v1081_v23 }
  0x8c   : > { %964 = vmatpush3.bf16.msra.mxu0 %v1081_v23 }
  0x8d   : > { %965 = vmatprep.subr.bf16.mxu0 %v1082_v24 }
  0x90   : > { %966 = vmatpush3.bf16.msra.mxu0 %v1082_v24 }
  0x91   : > { %967 = vmatprep.subr.bf16.mxu0 %v1083_v25 }
  0x94   : > { %968 = vmatpush3.bf16.msra.mxu0 %v1083_v25 }
  0x95   : > { %969 = vmatprep.subr.bf16.mxu0 %v1084_v26 }
  0x98   : > { %970 = vmatpush3.bf16.msra.mxu0 %v1084_v26 }
  0x99   : > { %971 = vmatprep.subr.bf16.mxu0 %v1085_v42 }
  0x9c   : > { %972 = vmatpush3.bf16.msra.mxu0 %v1085_v42 }
  0x9d   : > { %973 = vmatprep.subr.bf16.mxu0 %v1086_v43 }
  0xa0   : > { %974 = vmatpush3.bf16.msra.mxu0 %v1086_v43 }
  0xa1   : > { %975 = vmatprep.subr.bf16.mxu0 %v1087_v44 }
  0xa4   : > { %976 = vmatpush3.bf16.msra.mxu0 %v1087_v44 }
 0x147   : > { %v939_v27 = vpop.f32.mrf.mxu0 }
 0x148   : > { %v464_v33 = vadd.f32 %v939_v27, %v857_v29 }
 0x149   : > { %v455_v28 = vpop.f32.mrf.mxu0 }
 0x14a   : > { %v456_v31 = vadd.f32 %v857_v29, %v455_v28  ;;  %v472_v39 = vmax.f32 %v464_v33, 0.0 }
 0x14b   : > { %v940_v30 = vpop.f32.mrf.mxu0 }
 0x14c   : > { %v467_v32 = vadd.f32 %v940_v30, %v857_v29  ;;  %v470_v37 = vmax.f32 %v456_v31, 0.0 }
 0x14d   : > { %v458_v34 = vpop.f32.mrf.mxu0 }
 0x14e   : > { %v459_v35 = vadd.f32 %v857_v29, %v458_v34  ;;  %v473_v36 = vmax.f32 %v467_v32, 0.0 }
 0x150   : > { %v471_v38 = vmax.f32 %v459_v35, 0.0  ;;  %v475_v41 = vpack.c.bf16 %v473_v36, %v472_v39 }
 0x152   : > { %v474_v40 = vpack.c.bf16 %v471_v38, %v470_v37 }
 0x154   : > { %957 = vmatprep.mubr.bf16.mxu1 %v474_v40 }
 0x155   : > { %958 = vmatmul.mubr.bf16.vlgmr.msra.gmra.mxu1 %v475_v41 }
 0x215   : > { %v959_v45 = vpop.f32.mrf.mxu1 }
 0x216   : > { %v590_v51 = vadd.f32 %v959_v45, %v866_v47 }
 0x217   : > { %v581_v46 = vpop.f32.mrf.mxu1 }
 0x218   : > { %v582_v49 = vadd.f32 %v866_v47, %v581_v46  ;;  %v598_v57 = vmax.f32 %v590_v51, 0.0 }
 0x219   : > { %v960_v48 = vpop.f32.mrf.mxu1 }
 0x21a   : > { %v593_v50 = vadd.f32 %v960_v48, %v866_v47  ;;  %v596_v55 = vmax.f32 %v582_v49, 0.0 }
 0x21b   : > { %v584_v52 = vpop.f32.mrf.mxu1 }
 0x21c   : > { %v585_v53 = vadd.f32 %v866_v47, %v584_v52  ;;  %v599_v54 = vmax.f32 %v593_v50, 0.0 }
 0x21e   : > { %v597_v56 = vmax.f32 %v585_v53, 0.0  ;;  %v601_v59 = vpack.c.bf16 %v599_v54, %v598_v57 }
 0x220   : > { %v600_v58 = vpack.c.bf16 %v597_v56, %v596_v55 }
 0x222   : > { %977 = vmatprep.mubr.bf16.mxu0 %v600_v58 }
 0x223   : > { %978 = vmatmul.mubr.bf16.vlgmr.msra.gmra.mxu0 %v601_v59 }
 0x2e3   : > { %v979_v61 = vpop.f32.mrf.mxu0 }
 0x2e4   : > { %v716_v62 = vadd.f32 %v979_v61, %v875_v60 }
 0x2e5   : > { %v707_v63 = vpop.f32.mrf.mxu0 }
 0x2e6   : > { %724 = vst [vmem:[%s340_s21 + $0x10] sm:$0xff] %v716_v62  ;;  %v708_v0 = vadd.f32 %v875_v60, %v707_v63 }
 0x2e7   : > { %v980_v1 = vpop.f32.mrf.mxu0 }
 0x2e8   : > { %722 = vst [vmem:[%s340_s21] sm:$0xff] %v708_v0  ;;  %v719_v2 = vadd.f32 %v980_v1, %v875_v60 }
 0x2e9   : > { %v710_v3 = vpop.f32.mrf.mxu0 }
 0x2ea   : > { %725 = vst [vmem:[%s340_s21 + $0x18] sm:$0xff] %v719_v2  ;;  %v711_v4 = vadd.f32 %v875_v60, %v710_v3 }
 0x2ec   : > { %723 = vst [vmem:[%s340_s21 + $0x8] sm:$0xff] %v711_v4 }
 0x2ed   : > { %1207 = shalt.err (!%p1204_p9)
}
 0x2ee   : > { %s1208_s23 = scalar_lea.hbm %s1494_s18, 512  ;;  %s1212_s13 = scalar_lea.hbm %s1543_s7, 2048 }
 0x2ef   : > { %p1209_p1 = scmp.ne.s32.totalorder %s1494_s18, %s1208_s23  ;;  %p1213_p10 = scmp.lt.s32.totalorder %s1494_s18, %s1543_s7 }
 0x2f0   : > { %p1214_p12 = scmp.lt.s32.totalorder %s1212_s13, %s1208_s23 }
 0x2f1   : > { %p1210_p8 = pnand %p1209_p1, %p1563_p6 }
 0x2f2   : > { %p1215_p2 = por %p1214_p12, %p1213_p10 }
 0x2f3   : > { %p1211_p5 = pneg %p1210_p8 }
 0x2f5   : > { %p1216_p4 = pnand %p1215_p2, %p1211_p5 }
 0x2f7   : > { %1219 = shalt.err (!%p1216_p4)
}
 0x2f8   : > { %s1277_s15 = smov 128   ;;  %s1278_s22 = smov 8  }
 0x2f9   : > { %995 = dma.vmem_to_hbm [thread:$0]  (%p1563_p6), %s1489_s29, 512, %s1494_s18, %s727_s1, %s1277_s15, %s1277_s15, %s1278_s22  }
 0x2fa PF: > { %p1022_p11 = scmp.ge.s32.totalorder %s1266_s27, 2  ;;  %s755_s19 = sand.u32 1, %s1254_s24  }
 0x2fb   : > { %p1564_p13 = scmp.ne.s32.totalorder %s1550_s8, 0  ;;  %s756_s28 = scalar_lea.sflag [#allocation4], %s755_s19 }
 0x2fd   : > { %p1012_p3 = pnand %p1022_p11, %p1564_p13 }
 0x2ff   : > { %p1013_p0 = pneg %p1012_p3 }
 0x301   : > { %1249 = dma.done.wait (%p1013_p0), %s756_s28, 512  }
 0x302   : > { %1251 = vsyncadd (%p1013_p0), %s756_s28, 4294966784  ;;  %p22_p7 = scmp.ge.s32.totalorder %s1398_s14, 6   ;;  %s1565_s24 = smov %s1258_s25 }
 0x303   : > { %s1566_s25 = smov %s1262_s26  ;;  %s1567_s26 = smov %s1408_s17 }
 0x304   : > { %s1568_s27 = smov %s1398_s14  ;;  %24 = sbr.rel (!%p22_p7) target bundleno = 9 (0x9), region = 105 }
 0x309   :  { %761 = vsyncpa [#allocation3], 1 }
 0x30a   :  { %763 = vsyncpa [#allocation3 + $0x1], 1 }
 0x30b   :  { %764 = vsyncpa [#allocation6], 1 }
 0x30c   :  { %765 = vsyncpa [#allocation9], 1 }
 0x30d   :  { %766 = vsyncpa [#allocation4], 1 }
 0x30e   :  { %768 = vsyncpa [#allocation4 + $0x1], 1 }

</bundles_post_ra>
